<compile_context>
chip_gen: v5e
topology: v5e:2x2
jax: 0.10.0
libtpu: 0.0.40
codegen_flags: <defaults>
</compile_context>

<pallas_src>
import jax
import jax.numpy as jnp
import numpy as np
from jax.experimental import pallas as pl
from jax.experimental.pallas import tpu as pltpu

DIM_MODEL = 32
BATCH = 8
BN_EPS = 1e-5
LANES = 128

CELL_VOCAB = 6
NAME_VOCAB = 146

# per-branch encoder layers (fin, fout): Linear(32,16),(16,16),(16,8),(8,8),(8,4)
LAYER_SHAPES = [(32, 16), (16, 16), (16, 8), (8, 8), (8, 4)]

# ---- packed-slab row layout ------------------------------------------------
EMB_ROW = 0
EMB_HEIGHT = 160               # 6 cell rows + 146 name rows + 8 pad rows
W_ROWS = [160, 192, 224, 240]  # fused block-diagonal weights, layers 2..5
W_HEIGHTS = [32, 32, 16, 16]   # fused fan-in  (2 * per-branch fin)
W_WIDTHS = [32, 16, 16, 8]     # fused fan-out (2 * per-branch fout)
BIAS_ROW = 256                 # rows 256..260: fused bias rows, layers 1..5
VEC_ROW = 261                  # pool + final-Linear fold vector
TOTAL_ROWS = 264               # padded to a multiple of 8

XM_LANE = 8                    # x_means sits at lanes 8..9 of the padded input
ONE_LANE = 10                  # constant-1 lane (picks up the final bias)


# ------------------------------------------------------------------ kernel ---
def model_kernel(idx_ref, xm_ref, slab_ref, out_ref):
    B = out_ref.shape[0]

    # --- one-hot MXU gather (+ folded layer 1) -------------------------------
    idx = idx_ref[...]                                            # (B, 2) int32
    iota = jax.lax.broadcasted_iota(jnp.int32, (B, EMB_HEIGHT), 1)
    cell_hot = (iota == idx[:, 0:1]).astype(jnp.float32)
    name_hot = (iota == (idx[:, 1:2] + CELL_VOCAB)).astype(jnp.float32)
    onehot = cell_hot + name_hot                                  # (B, 160)

    # layer 1: gather + emb@W1 (folded at pack time) as one (B,160)x(160,32) dot
    w1 = slab_ref[EMB_ROW:EMB_ROW + EMB_HEIGHT, 0:32]
    b1 = slab_ref[BIAS_ROW:BIAS_ROW + 1, 0:32]
    h = jnp.maximum(
        jnp.dot(onehot, w1, preferred_element_type=jnp.float32) + b1, 0.0)

    # layers 2..5: fused block-diagonal (cell top-left | name bottom-right).
    # Last layer is loaded full lane width so the result is a lane-dense
    # (B,128) vreg with lanes 8..127 exactly zero.
    for i in range(4):
        width = W_WIDTHS[i] if i < 3 else LANES
        w = slab_ref[W_ROWS[i]:W_ROWS[i] + W_HEIGHTS[i], 0:width]
        b = slab_ref[BIAS_ROW + 1 + i:BIAS_ROW + 2 + i, 0:width]
        h = jnp.maximum(
            jnp.dot(h, w, preferred_element_type=jnp.float32) + b, 0.0)

    # h: (B,128) -- lanes 0..3 = cell branch, 4..7 = name branch, 8.. = 0.
    # AdaptiveAvgPool1d(1) + Linear(4,1) + x_means folded into one reduce:
    #   v[0:4]=w_cell/4, v[4:8]=w_name/4, v[8]=w_xm0, v[9]=w_xm1, v[10]=bias.
    combined = h + xm_ref[...]                                    # (B, 128)
    v = slab_ref[VEC_ROW:VEC_ROW + 1, :]                          # (1, 128)
    out = jnp.sum(combined * v, axis=-1, keepdims=True)           # (B, 1)

    # lane-dense store; wrapper keeps column 0
    out_ref[...] = jnp.broadcast_to(out, (B, LANES))


# --------------------------------------------------------------- parameters ---
def fold_bn(W, b, gamma, beta, rmean, rvar, eps=BN_EPS):
    """Fold eval-mode BatchNorm1d into the preceding Linear (W is (out,in))."""
    s = gamma / jnp.sqrt(rvar + eps)
    W_eff = W * s[:, None]
    b_eff = (b - rmean) * s + beta
    return W_eff.T.astype(jnp.float32), b_eff.reshape(1, -1).astype(jnp.float32)


def init_encoder_params(key, dim):
    sizes = [(dim, dim // 2), (dim // 2, dim // 2), (dim // 2, dim // 4),
             (dim // 4, dim // 4), (dim // 4, dim // 8)]
    params = []
    for fin, fout in sizes:
        key, k1, k2, k3, k4, k5, k6 = jax.random.split(key, 7)
        W = jax.random.uniform(k1, (fout, fin), minval=-1.0, maxval=1.0) / jnp.sqrt(fin)
        b = jax.random.uniform(k2, (fout,), minval=-1.0, maxval=1.0) / jnp.sqrt(fin)
        gamma = 1.0 + 0.1 * jax.random.normal(k3, (fout,))
        beta = 0.1 * jax.random.normal(k4, (fout,))
        rmean = 0.1 * jax.random.normal(k5, (fout,))
        rvar = jnp.abs(1.0 + 0.1 * jax.random.normal(k6, (fout,)))
        Wt, be = fold_bn(W, b, gamma, beta, rmean, rvar)
        params += [Wt, be]
    return params


def init_model_params(key, dim):
    k_ce, k_ne, k_cenc, k_nenc, k_lw, k_lb = jax.random.split(key, 6)
    cell_emb = 0.1 * jax.random.normal(k_ce, (CELL_VOCAB, dim), dtype=jnp.float32)
    name_emb = 0.1 * jax.random.normal(k_ne, (NAME_VOCAB, dim), dtype=jnp.float32)
    cell_enc = init_encoder_params(k_cenc, dim)
    name_enc = init_encoder_params(k_nenc, dim)
    lin_W = (jax.random.uniform(k_lw, (1, 4), minval=-1.0, maxval=1.0) / 2.0)
    lin_b = (jax.random.uniform(k_lb, (1,), minval=-1.0, maxval=1.0) / 2.0)
    lin_Wt = lin_W.T.astype(jnp.float32)              # (4, 1)
    lin_b2 = lin_b.reshape(1, 1).astype(jnp.float32)  # (1, 1)
    return cell_emb, name_emb, cell_enc, name_enc, lin_Wt, lin_b2


def pack_params(params):
    """Pack every parameter into one (TOTAL_ROWS, 128) f32 slab."""
    cell_emb, name_emb, cell_enc, name_enc, lin_Wt, lin_b2 = params
    slab = np.zeros((TOTAL_ROWS, LANES), np.float32)

    # --- layer 1 folded into the embedding tables (gather and Linear are both
    #     linear pre-ReLU, so emb @ W1 at pack time is exact) ---
    Wc1 = np.asarray(cell_enc[0], np.float32)
    bc1 = np.asarray(cell_enc[1], np.float32).reshape(-1)
    Wn1 = np.asarray(name_enc[0], np.float32)
    bn1 = np.asarray(name_enc[1], np.float32).reshape(-1)
    slab[0:CELL_VOCAB, 0:16] = np.asarray(cell_emb, np.float32) @ Wc1          # (6, 16)
    slab[CELL_VOCAB:CELL_VOCAB + NAME_VOCAB, 16:32] = (
        np.asarray(name_emb, np.float32) @ Wn1)                                # (146, 16)
    slab[BIAS_ROW, 0:16] = bc1
    slab[BIAS_ROW, 16:32] = bn1

    # --- layers 2..5: block-diagonal (cell top-left, name bottom-right) ---
    for i in range(4):
        fin, fout = LAYER_SHAPES[i + 1]
        Wc = np.asarray(cell_enc[2 * (i + 1)], np.float32)
        bc = np.asarray(cell_enc[2 * (i + 1) + 1], np.float32).reshape(-1)
        Wn = np.asarray(name_enc[2 * (i + 1)], np.float32)
        bn = np.asarray(name_enc[2 * (i + 1) + 1], np.float32).reshape(-1)
        r = W_ROWS[i]
        slab[r:r + fin, 0:fout] = Wc
        slab[r + fin:r + 2 * fin, fout:2 * fout] = Wn
        slab[BIAS_ROW + 1 + i, 0:fout] = bc
        slab[BIAS_ROW + 1 + i, fout:2 * fout] = bn

    # --- AdaptiveAvgPool1d(1) + final Linear(4,1) folded into one lane vector ---
    lw = np.asarray(lin_Wt, np.float32).reshape(-1)   # [w_cell, w_name, w_xm0, w_xm1]
    lb = float(np.asarray(lin_b2).reshape(()))
    slab[VEC_ROW, 0:4] = lw[0] / 4.0
    slab[VEC_ROW, 4:8] = lw[1] / 4.0
    slab[VEC_ROW, XM_LANE] = lw[2]
    slab[VEC_ROW, XM_LANE + 1] = lw[3]
    slab[VEC_ROW, ONE_LANE] = lb
    return jnp.asarray(slab)


# ----------------------------------------------------------------- wrapper ---
def model_forward(xs, x_means, slab):
    B = xs.shape[0]
    idx = xs.astype(jnp.int32)                                   # (B, 2)
    # Pad x_means into one full lane-dense vreg row; lane ONE_LANE carries the
    # 1.0 that picks up the final-linear bias from the reduce vector.
    xm128 = jnp.zeros((B, LANES), jnp.float32)
    xm128 = xm128.at[:, XM_LANE:XM_LANE + 2].set(x_means.astype(jnp.float32))
    xm128 = xm128.at[:, ONE_LANE].set(1.0)

    vmem = pl.BlockSpec(memory_space=pltpu.MemorySpace.VMEM)
    out = pl.pallas_call(
        model_kernel,
        out_shape=jax.ShapeDtypeStruct((B, LANES), jnp.float32),
        in_specs=[vmem, vmem, vmem],
        out_specs=vmem,
    )(idx, xm128, slab)
    # TODO(synk): if this model is ever run over many rows, add a batch grid
    # (row tiles TB>=128, dimension_semantics=("parallel",), slab index_map
    # lambda i: (0, 0)) so the slab stays resident, launch cost is amortized,
    # and v7x's second TensorCore is used.
    return out[:, 0:1]


# --------------------------------------------------------------- reference ---
def model_forward_ref(xs, x_means, params):
    cell_emb, name_emb, cell_enc, name_enc, lin_Wt, lin_b2 = params

    def encode(x, p):
        h = x
        for i in range(5):
            h = jnp.maximum(h @ p[2 * i] + p[2 * i + 1], 0.0)
        return jnp.mean(h, axis=-1, keepdims=True)

    cell_h = encode(cell_emb[xs[:, 0]], cell_enc)
    name_h = encode(name_emb[xs[:, 1]], name_enc)
    x = jnp.concatenate([cell_h, name_h, x_means], axis=1)
    return x @ lin_Wt + lin_b2


# -------------------------------------------------------------------- main ---
if __name__ == "__main__":
    key = jax.random.PRNGKey(0)
    k_params, k_cell, k_name, k_xm = jax.random.split(key, 4)

    params = init_model_params(k_params, DIM_MODEL)
    slab = pack_params(params)

    xs = jnp.stack(
        [jax.random.randint(k_cell, (BATCH,), 0, CELL_VOCAB),
         jax.random.randint(k_name, (BATCH,), 0, NAME_VOCAB)],
        axis=1).astype(jnp.int32)                                     # (B, 2)
    x_means = jax.random.normal(k_xm, (BATCH, 2), dtype=jnp.float32)  # (B, 2)

    out = model_forward(xs, x_means, slab)
    out = jax.block_until_ready(out)

    ref = model_forward_ref(xs, x_means, params)
    assert out.shape == (BATCH, 1)
    assert jnp.allclose(out, ref, atol=1e-4, rtol=1e-4), (out, ref)

    print("KERNEL_OK")
</pallas_src>

<mosaic_0001>
module attributes {stable_mosaic.version = 11 : i64} {
  func.func @model_kernel(%arg0: memref<8x2xi32, #tpu.memory_space<vmem>>, %arg1: memref<8x128xf32, #tpu.memory_space<vmem>>, %arg2: memref<264x128xf32, #tpu.memory_space<vmem>>, %arg3: memref<8x128xf32, #tpu.memory_space<vmem>>) attributes {dimension_semantics = [], scalar_prefetch = 0 : i64, scratch_operands = 0 : i64, tpu.core_type = #tpu.core_type<tc>} {
    %c0 = arith.constant 0 : index
    %c0_0 = arith.constant 0 : index
    %0 = vector.load %arg0[%c0, %c0_0] : memref<8x2xi32, #tpu.memory_space<vmem>>, vector<8x2xi32>
    %1 = tpu.iota {dimensions = array<i32: 1>} : vector<8x160xi32>
    %2 = vector.extract_strided_slice %0 {offsets = [0, 0], sizes = [8, 1], strides = [1, 1]} : vector<8x2xi32> to vector<8x1xi32>
    %3 = vector.broadcast %2 : vector<8x1xi32> to vector<8x160xi32>
    %4 = arith.cmpi eq, %1, %3 : vector<8x160xi32>
    %5 = arith.extui %4 : vector<8x160xi1> to vector<8x160xi32>
    %6 = arith.sitofp %5 : vector<8x160xi32> to vector<8x160xf32>
    %7 = vector.extract_strided_slice %0 {offsets = [0, 1], sizes = [8, 1], strides = [1, 1]} : vector<8x2xi32> to vector<8x1xi32>
    %c6_i32 = arith.constant 6 : i32
    %8 = vector.broadcast %c6_i32 : i32 to vector<8x1xi32>
    %9 = arith.addi %7, %8 : vector<8x1xi32>
    %10 = vector.broadcast %9 : vector<8x1xi32> to vector<8x160xi32>
    %11 = arith.cmpi eq, %1, %10 : vector<8x160xi32>
    %12 = arith.extui %11 : vector<8x160xi1> to vector<8x160xi32>
    %13 = arith.sitofp %12 : vector<8x160xi32> to vector<8x160xf32>
    %14 = arith.addf %6, %13 : vector<8x160xf32>
    %c0_1 = arith.constant 0 : index
    %c0_2 = arith.constant 0 : index
    %15 = vector.load %arg2[%c0_1, %c0_2] : memref<264x128xf32, #tpu.memory_space<vmem>>, vector<160x32xf32>
    %c256 = arith.constant 256 : index
    %c0_3 = arith.constant 0 : index
    %16 = vector.load %arg2[%c256, %c0_3] : memref<264x128xf32, #tpu.memory_space<vmem>>, vector<1x32xf32>
    %cst = arith.constant dense<0.000000e+00> : vector<8x32xf32>
    %17 = tpu.matmul %14, %15, %cst {dimension_numbers = #tpu.dot_dimension_numbers<[1], [0], [0], [1], [0, 0, 1, 1], [], []>} : vector<8x160xf32>, vector<160x32xf32>, vector<8x32xf32> -> vector<8x32xf32>
    %18 = vector.broadcast %16 : vector<1x32xf32> to vector<8x32xf32>
    %19 = arith.addf %17, %18 : vector<8x32xf32>
    %cst_4 = arith.constant 0.000000e+00 : f32
    %20 = vector.broadcast %cst_4 : f32 to vector<8x32xf32>
    %21 = arith.maximumf %19, %20 : vector<8x32xf32>
    %c160 = arith.constant 160 : index
    %c0_5 = arith.constant 0 : index
    %22 = vector.load %arg2[%c160, %c0_5] : memref<264x128xf32, #tpu.memory_space<vmem>>, vector<32x32xf32>
    %c257 = arith.constant 257 : index
    %c0_6 = arith.constant 0 : index
    %23 = vector.load %arg2[%c257, %c0_6] : memref<264x128xf32, #tpu.memory_space<vmem>>, vector<1x32xf32>
    %cst_7 = arith.constant dense<0.000000e+00> : vector<8x32xf32>
    %24 = tpu.matmul %21, %22, %cst_7 {dimension_numbers = #tpu.dot_dimension_numbers<[1], [0], [0], [1], [0, 0, 1, 1], [], []>} : vector<8x32xf32>, vector<32x32xf32>, vector<8x32xf32> -> vector<8x32xf32>
    %25 = vector.broadcast %23 : vector<1x32xf32> to vector<8x32xf32>
    %26 = arith.addf %24, %25 : vector<8x32xf32>
    %cst_8 = arith.constant 0.000000e+00 : f32
    %27 = vector.broadcast %cst_8 : f32 to vector<8x32xf32>
    %28 = arith.maximumf %26, %27 : vector<8x32xf32>
    %c192 = arith.constant 192 : index
    %c0_9 = arith.constant 0 : index
    %29 = vector.load %arg2[%c192, %c0_9] : memref<264x128xf32, #tpu.memory_space<vmem>>, vector<32x16xf32>
    %c258 = arith.constant 258 : index
    %c0_10 = arith.constant 0 : index
    %30 = vector.load %arg2[%c258, %c0_10] : memref<264x128xf32, #tpu.memory_space<vmem>>, vector<1x16xf32>
    %cst_11 = arith.constant dense<0.000000e+00> : vector<8x16xf32>
    %31 = tpu.matmul %28, %29, %cst_11 {dimension_numbers = #tpu.dot_dimension_numbers<[1], [0], [0], [1], [0, 0, 1, 1], [], []>} : vector<8x32xf32>, vector<32x16xf32>, vector<8x16xf32> -> vector<8x16xf32>
    %32 = vector.broadcast %30 : vector<1x16xf32> to vector<8x16xf32>
    %33 = arith.addf %31, %32 : vector<8x16xf32>
    %cst_12 = arith.constant 0.000000e+00 : f32
    %34 = vector.broadcast %cst_12 : f32 to vector<8x16xf32>
    %35 = arith.maximumf %33, %34 : vector<8x16xf32>
    %c224 = arith.constant 224 : index
    %c0_13 = arith.constant 0 : index
    %36 = vector.load %arg2[%c224, %c0_13] : memref<264x128xf32, #tpu.memory_space<vmem>>, vector<16x16xf32>
    %c259 = arith.constant 259 : index
    %c0_14 = arith.constant 0 : index
    %37 = vector.load %arg2[%c259, %c0_14] : memref<264x128xf32, #tpu.memory_space<vmem>>, vector<1x16xf32>
    %cst_15 = arith.constant dense<0.000000e+00> : vector<8x16xf32>
    %38 = tpu.matmul %35, %36, %cst_15 {dimension_numbers = #tpu.dot_dimension_numbers<[1], [0], [0], [1], [0, 0, 1, 1], [], []>} : vector<8x16xf32>, vector<16x16xf32>, vector<8x16xf32> -> vector<8x16xf32>
    %39 = vector.broadcast %37 : vector<1x16xf32> to vector<8x16xf32>
    %40 = arith.addf %38, %39 : vector<8x16xf32>
    %cst_16 = arith.constant 0.000000e+00 : f32
    %41 = vector.broadcast %cst_16 : f32 to vector<8x16xf32>
    %42 = arith.maximumf %40, %41 : vector<8x16xf32>
    %c240 = arith.constant 240 : index
    %c0_17 = arith.constant 0 : index
    %43 = vector.load %arg2[%c240, %c0_17] : memref<264x128xf32, #tpu.memory_space<vmem>>, vector<16x128xf32>
    %c260 = arith.constant 260 : index
    %c0_18 = arith.constant 0 : index
    %44 = vector.load %arg2[%c260, %c0_18] : memref<264x128xf32, #tpu.memory_space<vmem>>, vector<1x128xf32>
    %cst_19 = arith.constant dense<0.000000e+00> : vector<8x128xf32>
    %45 = tpu.matmul %42, %43, %cst_19 {dimension_numbers = #tpu.dot_dimension_numbers<[1], [0], [0], [1], [0, 0, 1, 1], [], []>} : vector<8x16xf32>, vector<16x128xf32>, vector<8x128xf32> -> vector<8x128xf32>
    %46 = vector.broadcast %44 : vector<1x128xf32> to vector<8x128xf32>
    %47 = arith.addf %45, %46 : vector<8x128xf32>
    %cst_20 = arith.constant 0.000000e+00 : f32
    %48 = vector.broadcast %cst_20 : f32 to vector<8x128xf32>
    %49 = arith.maximumf %47, %48 : vector<8x128xf32>
    %c0_21 = arith.constant 0 : index
    %c0_22 = arith.constant 0 : index
    %50 = vector.load %arg1[%c0_21, %c0_22] : memref<8x128xf32, #tpu.memory_space<vmem>>, vector<8x128xf32>
    %51 = arith.addf %49, %50 : vector<8x128xf32>
    %c261 = arith.constant 261 : index
    %c0_23 = arith.constant 0 : index
    %52 = vector.load %arg2[%c261, %c0_23] : memref<264x128xf32, #tpu.memory_space<vmem>>, vector<1x128xf32>
    %53 = vector.broadcast %52 : vector<1x128xf32> to vector<8x128xf32>
    %54 = arith.mulf %51, %53 : vector<8x128xf32>
    %cst_24 = arith.constant dense<0.000000e+00> : vector<8xf32>
    %55 = vector.multi_reduction <add>, %54, %cst_24 [1] : vector<8x128xf32> to vector<8xf32>
    %56 = vector.shape_cast %55 : vector<8xf32> to vector<8x1xf32>
    %57 = vector.shape_cast %56 : vector<8x1xf32> to vector<8x1xf32>
    %58 = vector.broadcast %57 : vector<8x1xf32> to vector<8x128xf32>
    %c0_25 = arith.constant 0 : index
    %c0_26 = arith.constant 0 : index
    %59 = vector.load %arg3[%c0_25, %c0_26] : memref<8x128xf32, #tpu.memory_space<vmem>>, vector<8x128xf32>
    tpu.vector_store %arg3[%c0_25, %c0_26], %58 {strides = array<i32>} : memref<8x128xf32, #tpu.memory_space<vmem>>, vector<8x128xf32>,
    return
  }
}

</mosaic_0001>

<bundles_post_ra>
// kernel: tpu_custom_call.1
= control target key start
LH: loop header
LB: loop body
LE: loop exit
PB: predicated region body
PF: predicated region fallthrough
CT: control target
= control target key end

     0   :  { %8 = vsyncpa [#allocation3], 0  ;;  %s383_s0 = inlined_call_operand.vmem [shape: s32[8,2], index: 0, kind: input, shape index: {}]   ;;  %s384_s1 = inlined_call_operand.vmem [shape: f32[8,128], index: 1, kind: input, shape index: {}]   ;;  %s385_s2 = inlined_call_operand.hbm [shape: f32[264,128], index: 2, kind: input, shape index: {}]   ;;  %s386_s3 = inlined_call_operand.hbm [shape: f32[8,128], index: 3, kind: output, shape index: {}]  }
   0x1   :  { %9 = vsyncpa [#allocation4], 0  ;;  %s18_s14 = sshll.u32 %s385_s2, 4  ;;  %s341_s15 = smov [#allocation2]   ;;  %s19_s14 = int_to_ptr.hbm [resolvable:$true] %s18_s14 }
   0x2   :  { %s20_s16 = sshll.u32 %s341_s15, 4  ;;  %s342_s17 = smov 128   ;;  %s21_s16 = int_to_ptr.vmem [resolvable:$true] %s20_s16 }
   0x3   :  { %s343_s18 = smov 8  }
   0x4   :  { %26 = dma.hbm_to_vmem [thread:$0]  %s19_s14, 4224, %s21_s16, [#allocation3], %s342_s17, %s342_s17, %s343_s18  }
   0x5   :  { %337 = dma.done.wait [#allocation3], 4224  }
   0x6   :  { %338 = vsyncadd [#allocation3], 4294963072  ;;  %v344_v0 = vmov 0   ;;  %v31_v1 = vld [vmem:[%s383_s0] sm:$0xff]  ;;  %v71_v2 = vld [vmem:[#allocation2 + $0x78] sm:$0xff]  ;;  %v345_v9 = vmov 1   ;;  %v32_v24 = vlaneseq }
   0x7   :  { %281 = vset.pattern.permute.xlu0 %v344_v0  ;;  %v70_v3 = vld [vmem:[#allocation2 + $0x70] sm:$0xff]  ;;  %82 = vmatpush.msra.mxu0 %v71_v2  ;;  %v69_v4 = vld [vmem:[#allocation2 + $0x68] sm:$0xff]  ;;  %v68_v5 = vld [vmem:[#allocation2 + $0x60] sm:$0xff]  ;;  %v44_v6 = vadd.s32 6, %v31_v1  ;;  %vm78_vm4 = vcmask 261120   ;;  %v346_v29 = vmov 0.0  }
   0x8   :  { %36 = vperm.xlu0 %281, %v31_v1   ;;  %v67_v7 = vld [vmem:[#allocation2 + $0x58] sm:$0xff]  ;;  %v66_v8 = vld [vmem:[#allocation2 + $0x50] sm:$0xff]  ;;  %v65_v10 = vld [vmem:[#allocation2 + $0x48] sm:$0xff]  ;;  %v33_v25 = vand.u32 127, %v32_v24  ;;  %vm187_vm5 = vcmask 130048   ;;  %s347_s21 = smov [#allocation5]  }
   0x9   :  { %83 = vmatpush.msra.mxu0 %v70_v3  ;;  %v64_v11 = vld [vmem:[#allocation2 + $0x40] sm:$0xff]  ;;  %v63_v12 = vld [vmem:[#allocation2 + $0x38] sm:$0xff]  ;;  %v62_v13 = vld [vmem:[#allocation2 + $0x30] sm:$0xff]  ;;  %s253_s22 = sshll.u32 %s347_s21, 4  ;;  %s255_s25 = sshll.u32 %s386_s3, 4  ;;  %s254_s22 = int_to_ptr.vmem [resolvable:$true] %s253_s22  ;;  %s256_s25 = int_to_ptr.hbm [resolvable:$true] %s255_s25 }
   0xa   :  { %v61_v14 = vld [vmem:[#allocation2 + $0x28] sm:$0xff]  ;;  %v60_v15 = vld [vmem:[#allocation2 + $0x20] sm:$0xff]  ;;  %v75_v16 = vld [vmem:[#allocation2 + $0x98] sm:$0xff]  ;;  %v34_v27 = vadd.s32 128, %v33_v25 }
   0xb   :  { %84 = vmatpush.msra.mxu0 %v69_v4  ;;  %v74_v17 = vld [vmem:[#allocation2 + $0x90] sm:$0xff]  ;;  %v59_v18 = vld [vmem:[#allocation2 + $0x18] sm:$0xff]  ;;  %114 = vmatpush.msra.mxu1 %v75_v16  ;;  %v57_v20 = vld [vmem:[#allocation2 + $0x8] sm:$0xff] }
   0xc   :  { %v58_v19 = vld [vmem:[#allocation2 + $0x10] sm:$0xff]  ;;  %v73_v21 = vld [vmem:[#allocation2 + $0x88] sm:$0xff]  ;;  %v56_v22 = vld [vmem:[#allocation2] sm:$0xff] }
   0xd   :  { %85 = vmatpush.msra.mxu0 %v68_v5  ;;  %115 = vmatpush.msra.mxu1 %v74_v17  ;;  %v72_v23 = vld [vmem:[#allocation2 + $0x80] sm:$0xff]  ;;  %v126_v36 = vld [vmem:[#allocation2 + $0xb8] sm:$0xff]  ;;  %v125_v37 = vld [vmem:[#allocation2 + $0xb0] sm:$0xff] }
   0xe   :  { %144 = vmatpush.msra.mxu2 %v126_v36  ;;  %v124_v38 = vld [vmem:[#allocation2 + $0xa8] sm:$0xff]  ;;  %v123_v39 = vld [vmem:[#allocation2 + $0xa0] sm:$0xff]  ;;  %v156_v40 = vld [vmem:[#allocation2 + $0xd8] sm:$0xff] }
   0xf   :  { %86 = vmatpush.msra.mxu0 %v67_v7  ;;  %116 = vmatpush.msra.mxu1 %v73_v21  ;;  %v283_v41 = vld [vmem:[#allocation2 + $0x100] ss:$0 sm:$0xff]  ;;  %v155_v47 = vld [vmem:[#allocation2 + $0xd0] sm:$0xff]  ;;  %v154_v48 = vld [vmem:[#allocation2 + $0xc8] sm:$0xff] }
  0x10   :  { %282 = vset.pattern.permute.xlu0 %v345_v9  ;;  %145 = vmatpush.msra.mxu2 %v125_v37  ;;  %v153_v49 = vld [vmem:[#allocation2 + $0xc0] sm:$0xff]  ;;  %v184_v50 = vld [vmem:[#allocation2 + $0xe8] sm:$0xff]  ;;  %v213_v56 = vld [vmem:[#allocation2 + $0xf8] sm:$0xff] }
  0x11   :  { %46 = vperm.xlu0 %282, %v44_v6   ;;  %87 = vmatpush.msra.mxu0 %v66_v8  ;;  %v284_v51 = vld [vmem:[#allocation2 + $0x101] ss:$0 sm:$0xff]  ;;  %v285_v57 = vld [vmem:[#allocation2 + $0x102] ss:$0 sm:$0xff]  ;;  %v212_v61 = vld [vmem:[#allocation2 + $0xf0] sm:$0xff] }
  0x12   :  { %117 = vmatpush.msra.mxu1 %v72_v23  ;;  %146 = vmatpush.msra.mxu2 %v124_v38  ;;  %v183_v55 = vld [vmem:[#allocation2 + $0xe0] sm:$0xff] }
  0x13   :  { %88 = vmatpush.msra.mxu0 %v65_v10  ;;  %174 = vmatpush.msra.mxu3 %v156_v40  ;;  %v286_v62 = vld [vmem:[#allocation2 + $0x103] ss:$0 sm:$0xff]  ;;  %v287_v2 = vld [vmem:[#allocation2 + $0x104] ss:$0 sm:$0xff]  ;;  %v288_v7 = vld [vmem:[#allocation2 + $0x105] ss:$0 sm:$0xff] }
  0x14   :  { %147 = vmatpush.msra.mxu2 %v123_v39  ;;  %205 = vmatpush.msrb.mxu1 %v184_v50  ;;  %v240_v5 = vld [vmem:[%s384_s1] sm:$0xff] }
  0x15   :  { %89 = vmatpush.msra.mxu0 %v64_v11  ;;  %175 = vmatpush.msra.mxu3 %v155_v47 }
  0x16   :  { %206 = vmatpush.msrb.mxu1 %v183_v55  ;;  %233 = vmatpush.msrb.mxu2 %v213_v56 }
  0x17   :  { %90 = vmatpush.msra.mxu0 %v63_v12  ;;  %176 = vmatpush.msra.mxu3 %v154_v48 }
  0x18   :  { %234 = vmatpush.msrb.mxu2 %v212_v61 }
  0x19   :  { %91 = vmatpush.msra.mxu0 %v62_v13  ;;  %177 = vmatpush.msra.mxu3 %v153_v49 }
  0x1b   :  { %92 = vmatpush.msra.mxu0 %v61_v14 }
  0x1d   :  { %93 = vmatpush.msra.mxu0 %v60_v15 }
  0x1f   :  { %94 = vmatpush.msra.mxu0 %v59_v18 }
  0x21   :  { %95 = vmatpush.msra.mxu0 %v58_v19 }
  0x23   :  { %96 = vmatpush.msra.mxu0 %v57_v20 }
  0x25   :  { %97 = vmatpush.msra.mxu0 %v56_v22 }
  0x7a   :  { %v37_v26 = vpop.permute.xlu0 %36 }
  0x7b   :  { %vm38_vm0 = vcmp.eq.s32.totalorder %v33_v25, %v37_v26  ;;  %vm39_vm1 = vcmp.eq.s32.totalorder %v34_v27, %v37_v26 }
  0x7c   :  { %v266_v30 = vsel %vm39_vm1, 1.0, %v346_v29  ;;  %v265_v33 = vsel %vm38_vm0, 1.0, %v346_v29 }
  0x83   :  { %v47_v28 = vpop.permute.xlu0 %46 }
  0x84   :  { %vm48_vm2 = vcmp.eq.s32.totalorder %v33_v25, %v47_v28  ;;  %vm49_vm3 = vcmp.eq.s32.totalorder %v34_v27, %v47_v28 }
  0x85   :  { %v267_v31 = vsel %vm48_vm2, 1.0, %v346_v29  ;;  %v268_v32 = vsel %vm49_vm3, 1.0, %v346_v29 }
  0x86   :  { %v55_v34 = vadd.f32 %v268_v32, %v266_v30  ;;  %v54_v35 = vadd.f32 %v267_v31, %v265_v33 }
  0x88   :  { %98 = vmatmul.f32.vlgmr.msra.gmra.mxu0 %v54_v35  ;;  %269 = vmatmul.msk.f32.vlgmr.msra.gmra.mxu1 %vm78_vm4, %v55_v34 }
 0x105   :  { %v99_v42 = vpop.f32.mrf.mxu0  ;;  %v119_v44 = vpop.f32.mrf.mxu1 }
 0x106   :  { %v100_v43 = vadd.f32 %v283_v41, %v99_v42 }
 0x108   :  { %v120_v45 = vadd.f32 %v119_v44, %v100_v43 }
 0x10a   :  { %v122_v46 = vmax.f32 %v120_v45, 0.0 }
 0x10c   :  { %270 = vmatmul.msk.f32.vlgmr.msra.gmra.mxu2 %vm78_vm4, %v122_v46 }
 0x18f   :  { %v149_v52 = vpop.f32.mrf.mxu2 }
 0x190   :  { %v150_v53 = vadd.f32 %v284_v51, %v149_v52 }
 0x192   :  { %v152_v54 = vmax.f32 %v150_v53, 0.0 }
 0x194   :  { %271 = vmatmul.msk.f32.vlgmr.msra.gmra.mxu3 %vm78_vm4, %v152_v54 }
 0x217   :  { %v179_v58 = vpop.f32.mrf.mxu3 }
 0x218   :  { %v180_v59 = vadd.f32 %v285_v57, %v179_v58 }
 0x21a   :  { %v182_v60 = vmax.f32 %v180_v59, 0.0 }
 0x21c   :  { %272 = vmatmul.msk.f32.vlgmr.msrb.gmra.mxu1 %vm187_vm5, %v182_v60 }
 0x299   :  { %v208_v63 = vpop.f32.mrf.mxu1 }
 0x29a   :  { %v209_v0 = vadd.f32 %v286_v62, %v208_v63 }
 0x29c   :  { %v211_v1 = vmax.f32 %v209_v0, 0.0 }
 0x29e   :  { %273 = vmatmul.msk.f32.vlgmr.msrb.gmra.mxu2 %vm187_vm5, %v211_v1 }
 0x321   :  { %v236_v3 = vpop.f32.mrf.mxu2 }
 0x322   :  { %v237_v4 = vadd.f32 %v287_v2, %v236_v3 }
 0x324   :  { %v239_v6 = vmax.f32 %v237_v4, 0.0 }
 0x326   :  { %v241_v8 = vadd.f32 %v240_v5, %v239_v6 }
 0x328   :  { %v244_v9 = vmul.f32 %v288_v7, %v241_v8 }
 0x32a   :  { %245 = vadd.xlane.f32.xlu1 %v244_v9 }
 0x39d   :  { %v246_v10 = vpop.xlane.xlu1 %245 }
 0x39e   :  { %247 = vst [vmem:[#allocation5] sm:$0xff] %v246_v10 }
 0x39f   :  { %258 = dma.vmem_to_hbm [thread:$0]  %s254_s22, 128, %s256_s25, [#allocation4]  }
 0x3a0   :  { %339 = dma.done.wait [#allocation4], 128  }
 0x3a1   :  { %340 = vsyncadd [#allocation4], 4294967168 }
 0x3a2   :  { %263 = vsyncpa [#allocation3], 1 }
 0x3a3   :  { %264 = vsyncpa [#allocation4], 1 }

</bundles_post_ra>
